<compile_context>
chip_gen: v7x
topology: tpu7x:2x2x1
jax: 0.10.0
libtpu: 0.0.40
codegen_flags: <defaults>
</compile_context>

<pallas_src>
import math

import jax
import jax.numpy as jnp
from jax.experimental import pallas as pl
from jax.experimental.pallas import tpu as pltpu


def _pos_embed_add_kernel(x_ref, pos_ref, o_ref):
    # x_ref, pos_ref, o_ref are all (tb, tc): same-shape add, no broadcast.
    o_ref[...] = x_ref[...] + pos_ref[...]


def _choose_blocks(rows, seq, hidden, itemsize,
                   target_bytes=2 * 1024 * 1024, force_min_row_tiles=1):
    """Pick a (tb, tc) tile for the (rows=B*S, H) layout.

    Legality: tb is a multiple of both S (so the pos table tiles exactly onto
    one row block) and the dtype's minimum sublane tile, unless tb == rows;
    tc is the full H or a multiple of 128.  The byte budget bounds the WHOLE
    (tb, tc) tile, so the double-buffered in+out+pos footprint is ~6x the
    target (<= ~12 MiB at the 2 MiB default) on every TPU generation.
    """
    min_sublane = 8 * max(1, 4 // itemsize)          # 8 f32 / 16 bf16 / 32 int8
    kb_unit = math.lcm(seq, min_sublane) // seq      # batches per legal row granule
    tb_unit = min(kb_unit * seq, rows)               # minimum legal row tile

    # Pathological-S escape hatch: never go below one legal (tb_unit, 128)
    # tile; the VMEM limit downstream is derived from the real footprint.
    target = max(target_bytes, tb_unit * min(hidden, 128) * itemsize)

    # Lane (last-dim) tile: full H if one minimal row group fits the budget,
    # otherwise the largest multiple of 128 that keeps (tb_unit, tc) in budget.
    if hidden <= 128 or tb_unit * hidden * itemsize <= target:
        tc = hidden
    else:
        tc = (target // (tb_unit * itemsize)) // 128 * 128
        tc = max(128, min(tc, (hidden // 128) * 128))

    # Row (sublane) tile: as many whole-S groups as fit the budget at this tc.
    rows_fit = max(1, target // (tc * itemsize))
    kb = max(kb_unit, (rows_fit // seq) // kb_unit * kb_unit)
    tb = min(kb * seq, rows)

    # Megacore: if everything landed in a single row block but the problem is
    # big enough, split the row axis so a second TensorCore (v7x) gets work.
    if force_min_row_tiles > 1 and tb >= rows:
        kb_split = -(-(rows // seq) // force_min_row_tiles)      # ceil(B / n)
        kb_split = -(-kb_split // kb_unit) * kb_unit             # round to granule
        if 0 < kb_split * seq < rows:
            tb = kb_split * seq
    return tb, tc


def apply_pos_embed(merge_tensor: jax.Array, pos_table: jax.Array,
                    *, target_tile_bytes: int = 2 * 1024 * 1024) -> jax.Array:
    """merge_tensor: [B, S, H]; pos_table: [S, H] -> merge_tensor + pos."""
    B, S, H = merge_tensor.shape
    assert pos_table.shape == (S, H), (pos_table.shape, (S, H))
    # Keep the add in the activation dtype (no f32 promotion of bf16 inputs).
    pos_table = pos_table.astype(merge_tensor.dtype)

    rows = B * S
    itemsize = jnp.dtype(merge_tensor.dtype).itemsize

    # Sublane-dense layout: every sublane row is real data even for tiny B;
    # lane dim is H (multiple of 128 for practical hidden sizes).
    # TODO(synk): if H > 128 and H % 128 != 0, pad the lane dim upstream
    # (where it is free) so the ragged column tile avoids masked stores.
    x2d = merge_tensor.reshape(rows, H)

    total_bytes = rows * H * itemsize
    force_rows = 2 if (total_bytes >= 4 * 1024 * 1024 and B >= 2) else 1
    tb, tc = _choose_blocks(rows, S, H, itemsize, target_tile_bytes, force_rows)

    # Replicate the pos table to exactly one row block so the kernel add is
    # same-shape (no sublane splat).  At most ~one tile of one-off HBM traffic.
    pos2d = jnp.tile(pos_table, (tb // S, 1)) if tb > S else pos_table

    # Column axis OUTER: the pos block index (0, j) is constant across the
    # inner (row) axis, so Pallas does not re-DMA the pos tile every step.
    grid = (pl.cdiv(H, tc), pl.cdiv(rows, tb))

    # VMEM limit derived from the actual footprint (x/out/pos, double-buffered)
    # plus slack; stays well under v7x's 64 MiB physical VMEM.
    tile_bytes = tb * tc * itemsize
    vmem_limit = int(min(64 << 20, max(6 * tile_bytes + (2 << 20), 16 << 20)))

    out2d = pl.pallas_call(
        _pos_embed_add_kernel,
        out_shape=jax.ShapeDtypeStruct((rows, H), merge_tensor.dtype),
        grid_spec=pltpu.PrefetchScalarGridSpec(
            num_scalar_prefetch=0,
            grid=grid,
            in_specs=[
                pl.BlockSpec((tb, tc), lambda j, i: (i, j)),   # merge rows
                pl.BlockSpec((tb, tc), lambda j, i: (0, j)),   # pos: resident per j
            ],
            out_specs=pl.BlockSpec((tb, tc), lambda j, i: (i, j)),
        ),
        # No input_output_aliases: without buffer donation it only triggers a
        # hidden defensive copy (~1.5x the kernel's entire HBM traffic).
        cost_estimate=pl.CostEstimate(
            flops=rows * H,
            transcendentals=0,
            bytes_accessed=(2 * rows * H + S * H) * itemsize,
        ),
        compiler_params=pltpu.CompilerParams(
            dimension_semantics=("parallel", "parallel"),
            vmem_limit_bytes=vmem_limit,
        ),
    )(x2d, pos2d)

    return out2d.reshape(B, S, H)


def doc_gcn_dict_merge_embedding(merge_tensor, overlap_adj, batch_sents_mask,
                                 pos_table=None):
    """Pallas equivalent of DocGCNDictMergeEmbedding.forward.

    data_dict / overlap_graph unpacking is Python glue: the caller supplies
    overlap_adj and batch_sents_mask directly (what get_tensors() returns).
    """
    assert merge_tensor.shape[1] == overlap_adj.shape[1]
    if pos_table is not None:
        merge_tensor = apply_pos_embed(merge_tensor, pos_table)
    # overlap_adj / batch_sents_mask are returned untouched (no compute).
    return merge_tensor, overlap_adj, batch_sents_mask


if __name__ == "__main__":
    B, S, H = 2, 8, 32  # small shapes: batch=2, seq(sentences)=8, hidden=32

    key = jax.random.PRNGKey(0)
    k_merge, k_adj, k_mask, k_pos = jax.random.split(key, 4)

    merge_tensor = jax.random.normal(k_merge, (B, S, H), dtype=jnp.float32)
    overlap_adj = (jax.random.uniform(k_adj, (B, S, S)) > 0.5).astype(jnp.float32)
    batch_sents_mask = (jax.random.uniform(k_mask, (B, S)) > 0.3).astype(jnp.float32)

    # Deterministic learned positional-embedding table (pos_embed's parameter).
    pos_table = 0.02 * jax.random.normal(k_pos, (S, H), dtype=jnp.float32)

    # Plain-JAX reference.
    ref = merge_tensor + pos_table[None, :, :]
    jax.block_until_ready(ref)

    out_merge, out_adj, out_mask = doc_gcn_dict_merge_embedding(
        merge_tensor, overlap_adj, batch_sents_mask, pos_table
    )
    jax.block_until_ready((out_merge, out_adj, out_mask))

    # Correctness checks against the plain-JAX reference / pass-through shapes.
    assert out_merge.shape == (B, S, H)
    assert jnp.allclose(out_merge, ref, atol=1e-6), "pos-embed add mismatch"
    assert out_adj.shape == (B, S, S)
    assert out_mask.shape == (B, S)
    assert jnp.allclose(out_adj, overlap_adj)
    assert jnp.allclose(out_mask, batch_sents_mask)

    print("KERNEL_OK")
</pallas_src>

<mosaic_0001>
module attributes {stable_mosaic.version = 11 : i64} {
  func.func @_pos_embed_add_kernel(%arg0: i32, %arg1: i32, %arg2: memref<16x32xf32, #tpu.memory_space<vmem>>, %arg3: memref<16x32xf32, #tpu.memory_space<vmem>>, %arg4: memref<16x32xf32, #tpu.memory_space<vmem>>) attributes {dimension_semantics = [#tpu.dimension_semantics<parallel>, #tpu.dimension_semantics<parallel>], iteration_bounds = array<i64: 1, 1>, scalar_prefetch = 0 : i64, scratch_operands = 0 : i64, tpu.core_type = #tpu.core_type<tc>, window_params = [{transform_indices = @transform_0, window_bounds = array<i64: 16, 32>}, {transform_indices = @transform_1, window_bounds = array<i64: 16, 32>}, {transform_indices = @transform_2, window_bounds = array<i64: 16, 32>}]} {
    %c0 = arith.constant 0 : index
    %c0_0 = arith.constant 0 : index
    %0 = vector.load %arg2[%c0, %c0_0] : memref<16x32xf32, #tpu.memory_space<vmem>>, vector<16x32xf32>
    %c0_1 = arith.constant 0 : index
    %c0_2 = arith.constant 0 : index
    %1 = vector.load %arg3[%c0_1, %c0_2] : memref<16x32xf32, #tpu.memory_space<vmem>>, vector<16x32xf32>
    %2 = arith.addf %0, %1 : vector<16x32xf32>
    %c0_3 = arith.constant 0 : index
    %c0_4 = arith.constant 0 : index
    %3 = vector.load %arg4[%c0_3, %c0_4] : memref<16x32xf32, #tpu.memory_space<vmem>>, vector<16x32xf32>
    tpu.vector_store %arg4[%c0_3, %c0_4], %2 {strides = array<i32>} : memref<16x32xf32, #tpu.memory_space<vmem>>, vector<16x32xf32>,
    return
  }
  func.func @transform_0(%arg0: i32, %arg1: i32) -> (i32, i32) {
    %c0_i32 = arith.constant 0 : i32
    return %arg1, %arg0 : i32, i32
  }
  func.func @transform_1(%arg0: i32, %arg1: i32) -> (i32, i32) {
    %c0_i32 = arith.constant 0 : i32
    %c0_i32_0 = arith.constant 0 : i32
    return %c0_i32, %arg0 : i32, i32
  }
  func.func @transform_2(%arg0: i32, %arg1: i32) -> (i32, i32) {
    %c0_i32 = arith.constant 0 : i32
    return %arg1, %arg0 : i32, i32
  }
}

</mosaic_0001>

<bundles_post_ra>
// kernel: tpu_custom_call.1
= control target key start
LH: loop header
LB: loop body
LE: loop exit
PB: predicated region body
PF: predicated region fallthrough
CT: control target
= control target key end

     0   :  { %7 = vsyncpa [#allocation3], 0  ;;  %s209_s0 = inlined_call_operand.hbm [shape: f32[16,32], index: 0, kind: input, shape index: {}]   ;;  %s210_s1 = inlined_call_operand.hbm [shape: f32[16,32], index: 1, kind: input, shape index: {}]   ;;  %s211_s2 = inlined_call_operand.hbm [shape: f32[16,32], index: 2, kind: output, shape index: {}]  }
   0x1   :  { %8 = vsyncpa [#allocation6], 0 }
   0x2   :  { %9 = vsyncpa [#allocation4], 0  ;;  %s144_s9 = smov [#allocation2]   ;;  %s72_s13 = scalar_lea.hbm %s209_s0, 256 }
   0x3   :  { %s15_s10 = sshll.u32 %s144_s9, 4  ;;  %p73_p0 = scmp.ne.s32.totalorder %s209_s0, %s72_s13  ;;  %s16_s10 = int_to_ptr.vmem [resolvable:$true] %s15_s10 }
   0x4   :  { %p76_p1 = scmp.lt.u32.totalorder %s72_s13, %s209_s0 }
   0x6   :  { %p78_p2 = pnand %p76_p1, %p73_p0 }
   0x8   :  { %81 = shalt.err (!%p78_p2)
}
   0x9   :  { %s82_s18 = scalar_lea.vmem %s16_s10, 256  ;;  %p87_p4 = scmp.lt.s32.totalorder %s16_s10, %s16_s10 }
   0xa   :  { %p83_p3 = scmp.ne.s32.totalorder %s16_s10, %s82_s18  ;;  %p88_p5 = scmp.lt.s32.totalorder %s82_s18, %s82_s18 }
   0xc   :  { %p89_p6 = por %p88_p5, %p87_p4 }
   0xe   :  { %p90_p7 = pnand %p89_p6, %p83_p3 }
  0x10   :  { %93 = shalt.err (!%p90_p7)
}
  0x11   :  { %s145_s19 = smov 128   ;;  %s146_s20 = smov 8  }
  0x12   :  { %21 = dma.hbm_to_vmem [thread:$0]  %s209_s0, 256, %s16_s10, [#allocation3], %s145_s19, %s145_s19, %s146_s20  }
  0x13   :  { %s147_s23 = smov [#allocation5]   ;;  %s94_s27 = scalar_lea.hbm %s210_s1, 256 }
  0x14   :  { %s27_s24 = sshll.u32 %s147_s23, 4  ;;  %p95_p8 = scmp.ne.s32.totalorder %s210_s1, %s94_s27  ;;  %s28_s24 = int_to_ptr.vmem [resolvable:$true] %s27_s24 }
  0x15   :  { %p98_p9 = scmp.lt.u32.totalorder %s94_s27, %s210_s1 }
  0x17   :  { %p100_p10 = pnand %p98_p9, %p95_p8 }
  0x19   :  { %103 = shalt.err (!%p100_p10)
}
  0x1a   :  { %s104_s4 = scalar_lea.vmem %s28_s24, 256  ;;  %p109_p12 = scmp.lt.s32.totalorder %s28_s24, %s28_s24 }
  0x1b   :  { %p105_p11 = scmp.ne.s32.totalorder %s28_s24, %s104_s4  ;;  %p110_p13 = scmp.lt.s32.totalorder %s104_s4, %s104_s4 }
  0x1d   :  { %p111_p0 = por %p110_p13, %p109_p12 }
  0x1f   :  { %p112_p1 = pnand %p111_p0, %p105_p11 }
  0x21   :  { %115 = shalt.err (!%p112_p1)
}
  0x22   :  { %33 = dma.hbm_to_vmem [thread:$0]  %s210_s1, 256, %s28_s24, [#allocation6], %s145_s19, %s145_s19, %s146_s20  }
  0x23   :  { %138 = dma.done.wait [#allocation3], 256  }
  0x24   :  { %139 = vsyncadd [#allocation3], 4294967040 }
  0x25   :  { %140 = dma.done.wait [#allocation6], 256  }
  0x26   :  { %141 = vsyncadd [#allocation6], 4294967040  ;;  %s148_s6 = smov [#allocation7]   ;;  %v40_v0 = vld [vmem:[#allocation2] sm:$0xff]  ;;  %v42_v1 = vld [vmem:[#allocation5] sm:$0xff]  ;;  %vm46_vm0 = vcmask 261120  }
  0x27   :  { %s54_s7 = sshll.u32 %s148_s6, 4  ;;  %v41_v2 = vld [vmem:[#allocation2 + $0x8] sm:$0xff]  ;;  %v44_v3 = vadd.f32 %v42_v1, %v40_v0  ;;  %v43_v4 = vld [vmem:[#allocation5 + $0x8] sm:$0xff]  ;;  %s55_s7 = int_to_ptr.vmem [resolvable:$true] %s54_s7 }
  0x28   :  { %v45_v5 = vadd.f32 %v43_v4, %v41_v2  ;;  %s116_s8 = scalar_lea.vmem %s55_s7, 256  ;;  %p121_p3 = scmp.lt.s32.totalorder %s55_s7, %s55_s7 }
  0x29   :  { %47 = vst.msk [vmem:[#allocation7] sm:$0xff] %vm46_vm0, %v44_v3  ;;  %p117_p2 = scmp.ne.s32.totalorder %s55_s7, %s116_s8  ;;  %p122_p4 = scmp.lt.s32.totalorder %s116_s8, %s116_s8 }
  0x2a   :  { %48 = vst.msk [vmem:[#allocation7 + $0x8] sm:$0xff] %vm46_vm0, %v45_v5 }
  0x2b   :  { %p123_p5 = por %p122_p4, %p121_p3 }
  0x2d   :  { %p124_p6 = pnand %p123_p5, %p117_p2 }
  0x2f   :  { %127 = shalt.err (!%p124_p6)
}
  0x30   :  { %s128_s10 = scalar_lea.hbm %s211_s2, 256 }
  0x31   :  { %p129_p7 = scmp.ne.s32.totalorder %s211_s2, %s128_s10  ;;  %p132_p8 = scmp.lt.u32.totalorder %s128_s10, %s211_s2 }
  0x33   :  { %p134_p9 = pnand %p132_p8, %p129_p7 }
  0x35   :  { %137 = shalt.err (!%p134_p9)
}
  0x36   :  { %60 = dma.vmem_to_hbm [thread:$0]  %s55_s7, 256, %s211_s2, [#allocation4], %s145_s19, %s145_s19, %s146_s20  }
  0x37   :  { %142 = dma.done.wait [#allocation4], 256  }
  0x38   :  { %143 = vsyncadd [#allocation4], 4294967040 }
  0x39   :  { %64 = vsyncpa [#allocation3], 1 }
  0x3a   :  { %65 = vsyncpa [#allocation6], 1 }
  0x3b   :  { %66 = vsyncpa [#allocation4], 1 }

</bundles_post_ra>
